<compile_context>
chip_gen: v7x
topology: tpu7x:2x2x1
jax: 0.10.0
libtpu: 0.0.40
codegen_flags: <defaults>
</compile_context>

<pallas_src>
import functools

import jax
import jax.numpy as jnp
from jax.experimental import pallas as pl
from jax.experimental.pallas import tpu as pltpu


def _round_up(n: int, m: int) -> int:
    return ((n + m - 1) // m) * m


def dynamics_kernel(x_ref, w1_ref, b1_ref, w2_ref, b2_ref, o_ref):
    # Cast x to the weight dtype in-kernel (free on the VPU; avoids a separate
    # XLA cast pass over the dominant x read stream).
    x = x_ref[...].astype(w1_ref.dtype)
    # Hidden layer: MXU matmul with f32 accumulate, then f32 bias + ReLU (VPU).
    h = jnp.dot(x, w1_ref[...], preferred_element_type=jnp.float32)
    h = jnp.maximum(h + b1_ref[...], 0.0)                      # (TB, HP) + (1, HP)
    # Output layer: operands in weight dtype, f32 accumulate + f32 bias add.
    y = jnp.dot(h.astype(w2_ref.dtype), w2_ref[...],
                preferred_element_type=jnp.float32)
    o_ref[...] = (y + b2_ref[...]).astype(o_ref.dtype)         # (TB, OBS) + (1, OBS)


def prepare_dynamics_params(w1, b1, w2, b2, *, compute_dtype=None):
    """One-time parameter prep (pad hidden dim to 128 lanes, optional bf16 cast).

    w1: (obs_dim + act_dim, hidden_dim), b1: (hidden_dim,)
    w2: (hidden_dim, obs_dim),           b2: (obs_dim,)
    Zero-padding of the hidden dim is exact: padded b1 entries are 0 ->
    ReLU(0)=0 hidden columns, and padded W2 rows are 0.
    """
    hidden = w1.shape[1]
    hp = _round_up(hidden, 128)
    w1p = jnp.pad(w1, ((0, 0), (0, hp - hidden)))
    b1p = jnp.pad(b1, (0, hp - hidden)).reshape(1, hp).astype(jnp.float32)
    w2p = jnp.pad(w2, ((0, hp - hidden), (0, 0)))               # obs_dim NOT padded
    b2p = b2.reshape(1, -1).astype(jnp.float32)
    if compute_dtype is not None:
        w1p = w1p.astype(compute_dtype)
        w2p = w2p.astype(compute_dtype)
    return w1p, b1p, w2p, b2p


def dynamics_net_forward(x, params, *, block_batch=256):
    """Fused DynamicsNet forward. `params` from prepare_dynamics_params()."""
    w1p, b1p, w2p, b2p = params
    batch, in_dim = x.shape
    hp = w1p.shape[1]
    obs_dim = w2p.shape[1]
    out_dtype = x.dtype

    # Batch tiling: one big tile if the batch fits, otherwise block_batch rows
    # per step. bf16 operands -> 16-row sublane multiple, else 8.
    row_mult = 16 if w1p.dtype == jnp.bfloat16 else 8
    bp = _round_up(batch, row_mult)
    tb = bp if bp <= block_batch else block_batch
    bp = _round_up(bp, tb)
    xq = x if bp == batch else jnp.pad(x, ((0, bp - batch), (0, 0)))
    grid = (bp // tb,)

    itemsize = lambda a: a.size * a.dtype.itemsize
    cost = pl.CostEstimate(
        flops=2 * bp * in_dim * hp + 2 * bp * hp * obs_dim,
        transcendentals=0,
        bytes_accessed=(itemsize(xq) + itemsize(w1p) + itemsize(w2p)
                        + itemsize(b1p) + itemsize(b2p)
                        + bp * obs_dim * jnp.dtype(out_dtype).itemsize),
    )

    # Guard the "weights fully resident in VMEM" strategy: raise the scoped
    # VMEM limit only when the resident weights + pipelined tiles need it.
    resident = itemsize(w1p) + itemsize(w2p) + itemsize(b1p) + itemsize(b2p)
    pipelined = 2 * tb * in_dim * xq.dtype.itemsize \
        + 2 * tb * obs_dim * jnp.dtype(out_dtype).itemsize \
        + 2 * tb * hp * 4                                     # f32 intermediates
    compiler_kwargs = {}
    if resident + pipelined > 24 * 1024 * 1024:
        compiler_kwargs["vmem_limit_bytes"] = min(
            int((resident + pipelined) * 3 // 2), 64 * 1024 * 1024)
    # TODO(synk): add a K/N-tiled fallback for W1/W2 if hidden_dim ever makes
    # the resident-weights strategy exceed the v7x 64 MiB VMEM ceiling.

    out = pl.pallas_call(
        dynamics_kernel,
        out_shape=jax.ShapeDtypeStruct((bp, obs_dim), out_dtype),
        grid=grid,
        in_specs=[
            pl.BlockSpec((tb, in_dim), lambda i: (i, 0)),   # x tile, pipelined
            pl.BlockSpec((in_dim, hp), lambda i: (0, 0)),   # W1 resident
            pl.BlockSpec((1, hp), lambda i: (0, 0)),        # b1 resident (f32)
            pl.BlockSpec((hp, obs_dim), lambda i: (0, 0)),  # W2 resident
            pl.BlockSpec((1, obs_dim), lambda i: (0, 0)),   # b2 resident (f32)
        ],
        out_specs=pl.BlockSpec((tb, obs_dim), lambda i: (i, 0)),
        compiler_params=pltpu.CompilerParams(
            dimension_semantics=("parallel",),
            **compiler_kwargs,
        ),
        cost_estimate=cost,
    )(xq, w1p, b1p, w2p, b2p)

    return out[:batch]


def dynamics_net(x, w1, b1, w2, b2, *, block_batch=256, compute_dtype=None):
    """Convenience wrapper (pads/casts weights per call; prefer preparing once)."""
    params = prepare_dynamics_params(w1, b1, w2, b2, compute_dtype=compute_dtype)
    return dynamics_net_forward(x, params, block_batch=block_batch)


if __name__ == "__main__":
    # Small shapes consistent with DynamicsNet(obs_dim, act_dim, hidden_dim=128).
    batch = 32
    obs_dim = 16
    act_dim = 8
    hidden_dim = 128          # nn.Module default
    in_dim = obs_dim + act_dim

    key = jax.random.PRNGKey(0)
    kx, kw1, kb1, kw2, kb2 = jax.random.split(key, 5)

    # Deterministic init, roughly matching nn.Linear's uniform scale.
    lim1 = 1.0 / jnp.sqrt(in_dim)
    lim2 = 1.0 / jnp.sqrt(hidden_dim)
    w1 = jax.random.uniform(kw1, (in_dim, hidden_dim), jnp.float32, -lim1, lim1)
    b1 = jax.random.uniform(kb1, (hidden_dim,), jnp.float32, -lim1, lim1)
    w2 = jax.random.uniform(kw2, (hidden_dim, obs_dim), jnp.float32, -lim2, lim2)
    b2 = jax.random.uniform(kb2, (obs_dim,), jnp.float32, -lim2, lim2)
    x = jax.random.normal(kx, (batch, in_dim), jnp.float32)

    ref = jnp.maximum(x @ w1 + b1, 0.0) @ w2 + b2

    fwd = jax.jit(dynamics_net_forward)

    # f32 path: weights prepared once, batch=32 -> single grid step.
    params_f32 = prepare_dynamics_params(w1, b1, w2, b2)
    out = jax.block_until_ready(fwd(x, params_f32))
    assert out.shape == (batch, obs_dim)
    assert jnp.allclose(out, ref, atol=1e-5, rtol=1e-5)

    # bf16-operand path (f32 accumulate, in-kernel x cast): loose tolerance.
    params_bf16 = prepare_dynamics_params(w1, b1, w2, b2,
                                          compute_dtype=jnp.bfloat16)
    out_bf16 = jax.block_until_ready(fwd(x, params_bf16))
    assert out_bf16.shape == (batch, obs_dim)
    assert jnp.allclose(out_bf16, ref, atol=5e-2, rtol=5e-2)

    print("KERNEL_OK")
</pallas_src>

<mosaic_0001>
module attributes {stable_mosaic.version = 11 : i64} {
  func.func @dynamics_kernel(%arg0: i32, %arg1: memref<32x24xf32, #tpu.memory_space<vmem>>, %arg2: memref<24x128xf32, #tpu.memory_space<vmem>>, %arg3: memref<1x128xf32, #tpu.memory_space<vmem>>, %arg4: memref<128x16xf32, #tpu.memory_space<vmem>>, %arg5: memref<1x16xf32, #tpu.memory_space<vmem>>, %arg6: memref<32x16xf32, #tpu.memory_space<vmem>>) attributes {dimension_semantics = [#tpu.dimension_semantics<parallel>], iteration_bounds = array<i64: 1>, scalar_prefetch = 0 : i64, scratch_operands = 0 : i64, tpu.core_type = #tpu.core_type<tc>, window_params = [{transform_indices = @transform_0, window_bounds = array<i64: 32, 24>}, {pipeline_mode = #tpu.pipeline_mode<synchronous>, transform_indices = @transform_1, window_bounds = array<i64: 24, 128>}, {pipeline_mode = #tpu.pipeline_mode<synchronous>, transform_indices = @transform_2, window_bounds = array<i64: 1, 128>}, {pipeline_mode = #tpu.pipeline_mode<synchronous>, transform_indices = @transform_3, window_bounds = array<i64: 128, 16>}, {pipeline_mode = #tpu.pipeline_mode<synchronous>, transform_indices = @transform_4, window_bounds = array<i64: 1, 16>}, {transform_indices = @transform_5, window_bounds = array<i64: 32, 16>}]} {
    %c0 = arith.constant 0 : index
    %c0_0 = arith.constant 0 : index
    %0 = vector.load %arg1[%c0, %c0_0] : memref<32x24xf32, #tpu.memory_space<vmem>>, vector<32x24xf32>
    %c0_1 = arith.constant 0 : index
    %c0_2 = arith.constant 0 : index
    %1 = vector.load %arg2[%c0_1, %c0_2] : memref<24x128xf32, #tpu.memory_space<vmem>>, vector<24x128xf32>
    %cst = arith.constant dense<0.000000e+00> : vector<32x128xf32>
    %2 = tpu.matmul %0, %1, %cst {dimension_numbers = #tpu.dot_dimension_numbers<[1], [0], [0], [1], [0, 0, 1, 1], [], []>} : vector<32x24xf32>, vector<24x128xf32>, vector<32x128xf32> -> vector<32x128xf32>
    %c0_3 = arith.constant 0 : index
    %c0_4 = arith.constant 0 : index
    %3 = vector.load %arg3[%c0_3, %c0_4] : memref<1x128xf32, #tpu.memory_space<vmem>>, vector<1x128xf32>
    %4 = vector.broadcast %3 : vector<1x128xf32> to vector<32x128xf32>
    %5 = arith.addf %2, %4 : vector<32x128xf32>
    %cst_5 = arith.constant 0.000000e+00 : f32
    %6 = vector.broadcast %cst_5 : f32 to vector<32x128xf32>
    %7 = arith.maximumf %5, %6 : vector<32x128xf32>
    %c0_6 = arith.constant 0 : index
    %c0_7 = arith.constant 0 : index
    %8 = vector.load %arg4[%c0_6, %c0_7] : memref<128x16xf32, #tpu.memory_space<vmem>>, vector<128x16xf32>
    %cst_8 = arith.constant dense<0.000000e+00> : vector<32x16xf32>
    %9 = tpu.matmul %7, %8, %cst_8 {dimension_numbers = #tpu.dot_dimension_numbers<[1], [0], [0], [1], [0, 0, 1, 1], [], []>} : vector<32x128xf32>, vector<128x16xf32>, vector<32x16xf32> -> vector<32x16xf32>
    %c0_9 = arith.constant 0 : index
    %c0_10 = arith.constant 0 : index
    %10 = vector.load %arg5[%c0_9, %c0_10] : memref<1x16xf32, #tpu.memory_space<vmem>>, vector<1x16xf32>
    %11 = vector.broadcast %10 : vector<1x16xf32> to vector<32x16xf32>
    %12 = arith.addf %9, %11 : vector<32x16xf32>
    %c0_11 = arith.constant 0 : index
    %c0_12 = arith.constant 0 : index
    %13 = vector.load %arg6[%c0_11, %c0_12] : memref<32x16xf32, #tpu.memory_space<vmem>>, vector<32x16xf32>
    tpu.vector_store %arg6[%c0_11, %c0_12], %12 {strides = array<i32>} : memref<32x16xf32, #tpu.memory_space<vmem>>, vector<32x16xf32>,
    return
  }
  func.func @transform_0(%arg0: i32) -> (i32, i32) {
    %c0_i32 = arith.constant 0 : i32
    %c0_i32_0 = arith.constant 0 : i32
    return %arg0, %c0_i32 : i32, i32
  }
  func.func @transform_1(%arg0: i32) -> (i32, i32) {
    %c0_i32 = arith.constant 0 : i32
    %c0_i32_0 = arith.constant 0 : i32
    %c0_i32_1 = arith.constant 0 : i32
    return %c0_i32, %c0_i32_0 : i32, i32
  }
  func.func @transform_2(%arg0: i32) -> (i32, i32) {
    %c0_i32 = arith.constant 0 : i32
    %c0_i32_0 = arith.constant 0 : i32
    %c0_i32_1 = arith.constant 0 : i32
    return %c0_i32, %c0_i32_0 : i32, i32
  }
  func.func @transform_3(%arg0: i32) -> (i32, i32) {
    %c0_i32 = arith.constant 0 : i32
    %c0_i32_0 = arith.constant 0 : i32
    %c0_i32_1 = arith.constant 0 : i32
    return %c0_i32, %c0_i32_0 : i32, i32
  }
  func.func @transform_4(%arg0: i32) -> (i32, i32) {
    %c0_i32 = arith.constant 0 : i32
    %c0_i32_0 = arith.constant 0 : i32
    %c0_i32_1 = arith.constant 0 : i32
    return %c0_i32, %c0_i32_0 : i32, i32
  }
  func.func @transform_5(%arg0: i32) -> (i32, i32) {
    %c0_i32 = arith.constant 0 : i32
    %c0_i32_0 = arith.constant 0 : i32
    return %arg0, %c0_i32 : i32, i32
  }
}

</mosaic_0001>

<bundles_post_ra>
// kernel: dynamics_net_forward.1
= control target key start
LH: loop header
LB: loop body
LE: loop exit
PB: predicated region body
PF: predicated region fallthrough
CT: control target
= control target key end

     0   :  { %vm34_vm0 = vcmask 195584   ;;  %vm244_vm1 = vcmask 130048   ;;  %s493_s1 = inlined_call_operand.vmem [shape: f32[24,128], index: 1, kind: input, shape index: {}]   ;;  %s494_s0 = inlined_call_operand.vmem [shape: f32[32,24], index: 0, kind: input, shape index: {}]   ;;  %s495_s3 = inlined_call_operand.vmem [shape: f32[128,16], index: 3, kind: input, shape index: {}]   ;;  %s496_s2 = inlined_call_operand.vmem [shape: f32[1,128], index: 2, kind: input, shape index: {}]   ;;  %s497_s4 = inlined_call_operand.vmem [shape: f32[1,16], index: 4, kind: input, shape index: {}]   ;;  %s498_s5 = inlined_call_operand.vmem [shape: f32[32,16], index: 5, kind: output, shape index: {}]  }
   0x1   :  { %v24_v0 = vld [vmem:[%s493_s1] sm:$0xff]  ;;  %v25_v1 = vld [vmem:[%s493_s1 + $0x8] sm:$0xff]  ;;  %v26_v4 = vld [vmem:[%s493_s1 + $0x10] sm:$0xff] }
   0x2   :  { %v336_v2 = vpack.c.bf16 %v25_v1, %v24_v0  ;;  %v20_v3 = vld [vmem:[%s494_s0] sm:$0xff]  ;;  %v137_v6 = vld [vmem:[%s495_s3 + $0x8] sm:$0xff]  ;;  %v138_v8 = vld [vmem:[%s495_s3 + $0x10] sm:$0xff] }
   0x3   :  { %292 = vmatprep.mubr.msk.f32.mxu0 %vm34_vm0, %v20_v3  ;;  %v136_v5 = vld [vmem:[%s495_s3] sm:$0xff]  ;;  %v139_v9 = vld [vmem:[%s495_s3 + $0x18] sm:$0xff]  ;;  %v141_v12 = vld [vmem:[%s495_s3 + $0x28] sm:$0xff] }
   0x4   :  { %337 = vmatprep.subr.bf16.mxu0 %v336_v2  ;;  %v340_v7 = vpack.c.bf16 %v137_v6, %v136_v5  ;;  %v344_v10 = vpack.c.bf16 %v139_v9, %v138_v8  ;;  %v140_v11 = vld [vmem:[%s495_s3 + $0x20] sm:$0xff]  ;;  %v21_v13 = vld [vmem:[%s494_s0 + $0x8] sm:$0xff]  ;;  %v22_v14 = vld [vmem:[%s494_s0 + $0x10] sm:$0xff] }
   0x5   :  { %339 = vmatpush3.bf16.msra.mxu0 %v336_v2  ;;  %v348_v15 = vpack.c.bf16 %v141_v12, %v140_v11  ;;  %v142_v16 = vld [vmem:[%s495_s3 + $0x30] sm:$0xff]  ;;  %v143_v17 = vld [vmem:[%s495_s3 + $0x38] sm:$0xff]  ;;  %v144_v20 = vld [vmem:[%s495_s3 + $0x40] sm:$0xff] }
   0x6   :  { %290 = vmatprep.subr.mxu0 %v26_v4  ;;  %341 = vmatprep.subr.bf16.mxu1 %v340_v7  ;;  %v23_v18 = vld [vmem:[%s494_s0 + $0x18] sm:$0xff]  ;;  %v352_v19 = vpack.c.bf16 %v143_v17, %v142_v16  ;;  %v145_v21 = vld [vmem:[%s495_s3 + $0x48] sm:$0xff]  ;;  %v146_v23 = vld [vmem:[%s495_s3 + $0x50] sm:$0xff] }
   0x7   :  { %343 = vmatpush3.bf16.msra.mxu1 %v340_v7  ;;  %v356_v22 = vpack.c.bf16 %v145_v21, %v144_v20  ;;  %v147_v24 = vld [vmem:[%s495_s3 + $0x58] sm:$0xff]  ;;  %v148_v26 = vld [vmem:[%s495_s3 + $0x60] sm:$0xff]  ;;  %v149_v27 = vld [vmem:[%s495_s3 + $0x68] sm:$0xff] }
   0x8   :  { %345 = vmatprep.subr.bf16.mxu1 %v344_v10  ;;  %v360_v25 = vpack.c.bf16 %v147_v24, %v146_v23  ;;  %v364_v28 = vpack.c.bf16 %v149_v27, %v148_v26  ;;  %v150_v29 = vld [vmem:[%s495_s3 + $0x70] sm:$0xff]  ;;  %v151_v30 = vld [vmem:[%s495_s3 + $0x78] sm:$0xff]  ;;  %v253_v32 = vld [vmem:[%s496_s2] ss:$0 sm:$0xff] }
   0x9   :  { %291 = vmatpush3.msra.mxu0 %v26_v4  ;;  %v368_v31 = vpack.c.bf16 %v151_v30, %v150_v29  ;;  %v258_v45 = vld [vmem:[%s497_s4] ss:$0 sm:$0xff] }
   0xa   :  { %293 = vmatmul.mubr.msk.f32.vlgmr.msra.gmra.mrb[0].mxu0 %vm34_vm0, %v21_v13 }
   0xb   :  { %295 = vmatprep.mubr.msk.f32.mxu0 %vm34_vm0, %v22_v14  ;;  %347 = vmatpush3.bf16.msra.mxu1 %v344_v10 }
   0xc   :  { %349 = vmatprep.subr.bf16.mxu1 %v348_v15 }
   0xe   :  { %296 = vmatmul.mubr.msk.f32.gmra.mrb[2].mxu0 %vm34_vm0, %v23_v18 }
   0xf   :  { %351 = vmatpush3.bf16.msra.mxu1 %v348_v15 }
  0x10   :  { %353 = vmatprep.subr.bf16.mxu1 %v352_v19 }
  0x13   :  { %355 = vmatpush3.bf16.msra.mxu1 %v352_v19 }
  0x14   :  { %357 = vmatprep.subr.bf16.mxu1 %v356_v22 }
  0x17   :  { %359 = vmatpush3.bf16.msra.mxu1 %v356_v22 }
  0x18   :  { %361 = vmatprep.subr.bf16.mxu1 %v360_v25 }
  0x1b   :  { %363 = vmatpush3.bf16.msra.mxu1 %v360_v25 }
  0x1c   :  { %365 = vmatprep.subr.bf16.mxu1 %v364_v28 }
  0x1f   :  { %367 = vmatpush3.bf16.msra.mxu1 %v364_v28 }
  0x20   :  { %369 = vmatprep.subr.bf16.mxu1 %v368_v31 }
  0x23   :  { %371 = vmatpush3.bf16.msra.mxu1 %v368_v31 }
  0xdd   :  { %v294_v33 = vpop.f32.mrb[0].mxu0 }
  0xde   :  { %v119_v34 = vadd.f32 %v294_v33, %v253_v32  ;;  %v113_v35 = vpop.f32.mrb[1].mxu0 }
  0xdf   :  { %v114_v36 = vadd.f32 %v253_v32, %v113_v35 }
  0xe0   :  { %v133_v39 = vmax.f32 %v119_v34, 0.0 }
  0xe1   :  { %v297_v37 = vpop.f32.mrb[2].mxu0  ;;  %v132_v38 = vmax.f32 %v114_v36, 0.0 }
  0xe2   :  { %v129_v40 = vadd.f32 %v297_v37, %v253_v32  ;;  %v123_v41 = vpop.f32.mrb[3].mxu0 }
  0xe3   :  { %v124_v42 = vadd.f32 %v253_v32, %v123_v41  ;;  %330 = vmatprep.mubr.f32.mxu1 %v132_v38 }
  0xe4   :  { %331 = vmatmul.mubr.f32.vlgmr.msra.gmra.mrb[0].mxu1 %v133_v39  ;;  %v135_v44 = vmax.f32 %v129_v40, 0.0 }
  0xe5   :  { %v134_v43 = vmax.f32 %v124_v42, 0.0 }
  0xe7   :  { %333 = vmatprep.mubr.f32.mxu1 %v134_v43 }
  0xe8   :  { %334 = vmatmul.mubr.f32.gmra.mrb[2].mxu1 %v135_v44 }
 0x1b7   :  { %v332_v46 = vpop.f32.mrb[0].mxu1 }
 0x1b8   :  { %v231_v47 = vadd.f32 %v332_v46, %v258_v45  ;;  %v225_v48 = vpop.f32.mrb[1].mxu1 }
 0x1b9   :  { %v226_v49 = vadd.f32 %v258_v45, %v225_v48 }
 0x1ba   :  { %246 = vst.msk [vmem:[%s498_s5 + $0x8] sm:$0xff] %vm244_vm1, %v231_v47 }
 0x1bb   :  { %245 = vst.msk [vmem:[%s498_s5] sm:$0xff] %vm244_vm1, %v226_v49  ;;  %v335_v50 = vpop.f32.mrb[2].mxu1 }
 0x1bc   :  { %v241_v51 = vadd.f32 %v335_v50, %v258_v45  ;;  %v235_v52 = vpop.f32.mrb[3].mxu1 }
 0x1bd   :  { %v236_v53 = vadd.f32 %v258_v45, %v235_v52 }
 0x1be   :  { %248 = vst.msk [vmem:[%s498_s5 + $0x18] sm:$0xff] %vm244_vm1, %v241_v51 }
 0x1bf   :  { %247 = vst.msk [vmem:[%s498_s5 + $0x10] sm:$0xff] %vm244_vm1, %v236_v53 }

</bundles_post_ra>
